<compile_context>
chip_gen: v7x
topology: tpu7x:2x2x1
jax: 0.10.0
libtpu: 0.0.40
codegen_flags: <defaults>
</compile_context>

<pallas_src>
import math
import functools

import jax
import jax.numpy as jnp
import numpy as np
from jax.experimental import pallas as pl
from jax.experimental.pallas import tpu as pltpu


def _flash_attention_kernel(q_ref, k_ref, v_ref, o_ref,
                            m_ref, l_ref, acc_ref, *, scale):
    """One (batch-tile, q-tile, kv-tile) step of online-softmax attention."""
    kv = pl.program_id(2)

    @pl.when(kv == 0)
    def _():
        m_ref[...] = jnp.full_like(m_ref, -jnp.inf)
        l_ref[...] = jnp.zeros_like(l_ref)
        acc_ref[...] = jnp.zeros_like(acc_ref)

    q = q_ref[...]                      # (bt, tq, Dk)  input dtype
    k = k_ref[...]                      # (bt, tk, Dk)
    v = v_ref[...]                      # (bt, tk, Dv)

    # e = (q / scaling_factor) @ k^T  — scale folded into the small q tile.
    qs = q * scale
    s = jnp.einsum("bqd,bkd->bqk", qs, k,
                   preferred_element_type=jnp.float32)      # (bt, tq, tk) f32

    m_prev = m_ref[...]
    m_new = jnp.maximum(m_prev, jnp.max(s, axis=-1, keepdims=True))
    alpha = jnp.exp(m_prev - m_new)
    p = jnp.exp(s - m_new)

    l_ref[...] = alpha * l_ref[...] + jnp.sum(p, axis=-1, keepdims=True)
    acc_ref[...] = alpha * acc_ref[...] + jnp.einsum(
        "bqk,bkd->bqd", p.astype(v.dtype), v,
        preferred_element_type=jnp.float32)
    m_ref[...] = m_new

    @pl.when(kv == pl.num_programs(2) - 1)
    def _():
        # EUP approximate reciprocal + one Newton step (cheap, keeps ~1e-6 acc).
        l_val = l_ref[...]
        inv = pl.reciprocal(l_val, approx=True)
        inv = inv * (2.0 - l_val * inv)
        o_ref[...] = (acc_ref[...] * inv).astype(o_ref.dtype)


def _pick_tile(dim, cap):
    """Largest sublane-friendly (multiple-of-8) tile <= cap dividing dim.

    Falls back to the full dim (always a legal block shape)."""
    cap = min(dim, cap)
    for t in range(cap - cap % 8, 7, -8):
        if dim % t == 0:
            return t
    return dim


def _pick_batch_tile(batch, cap):
    bt = max(1, min(batch, cap))
    while batch % bt:
        bt -= 1
    return bt


def dot_product_attention(q, k, v, scaling_factor=None, dropout=0.0):
    """Pallas port of DotProductAttention.forward (dropout=0 -> identity)."""
    assert dropout == 0.0  # TODO(synk): training-mode dropout not implemented (module default p=0)
    B, S, Dk = q.shape
    Dv = v.shape[2]
    if scaling_factor is None:
        scaling_factor = 1.0 / math.sqrt(Dk)
    # Module computes e = q @ k^T / scaling_factor; fold the divide into a
    # compile-time multiply applied to the q tile.
    scale = 1.0 / float(scaling_factor)

    # Tile sizes: caps chosen to fit v5e/v6e/v7x VMEM with double buffering.
    tq = _pick_tile(S, 128)
    tk = _pick_tile(S, 256)
    # In the tiny-sequence regime, pack several batch elements into one grid
    # step so the MXU/sublanes are not starved and per-step overhead amortizes.
    bt = _pick_batch_tile(B, max(1, 512 // max(tq, 8)))

    grid = (B // bt, S // tq, S // tk)

    kernel = functools.partial(_flash_attention_kernel, scale=scale)

    return pl.pallas_call(
        kernel,
        out_shape=jax.ShapeDtypeStruct((B, S, Dv), q.dtype),
        grid_spec=pltpu.PrefetchScalarGridSpec(
            num_scalar_prefetch=0,
            grid=grid,
            in_specs=[
                pl.BlockSpec((bt, tq, Dk), lambda b, qi, ki: (b, qi, 0)),
                pl.BlockSpec((bt, tk, Dk), lambda b, qi, ki: (b, ki, 0)),
                pl.BlockSpec((bt, tk, Dv), lambda b, qi, ki: (b, ki, 0)),
            ],
            out_specs=pl.BlockSpec((bt, tq, Dv), lambda b, qi, ki: (b, qi, 0)),
            scratch_shapes=[
                pltpu.VMEM((bt, tq, 1), jnp.float32),   # running max m
                pltpu.VMEM((bt, tq, 1), jnp.float32),   # running denom l
                pltpu.VMEM((bt, tq, Dv), jnp.float32),  # running accumulator
            ],
        ),
        compiler_params=pltpu.CompilerParams(
            dimension_semantics=("parallel", "parallel", "arbitrary"),
            # Explicit scoped-VMEM limit: above the 32 MiB default, with
            # headroom under v7x's 64 MiB physical VMEM.
            vmem_limit_bytes=48 * 1024 * 1024,
        ),
    )(q, k, v)


def _reference(q, k, v, scaling_factor=None):
    # Pure-JAX reference matching the PyTorch forward exactly.
    if scaling_factor is None:
        scaling_factor = 1.0 / math.sqrt(q.shape[2])
    e = jnp.einsum("bqd,bkd->bqk", q, k) / scaling_factor
    w = jax.nn.softmax(e, axis=-1)
    return jnp.einsum("bqk,bkd->bqd", w, v)


if __name__ == "__main__":
    key = jax.random.PRNGKey(0)
    kq, kk, kv_key = jax.random.split(key, 3)

    B, S, Dk, Dv = 2, 8, 32, 32
    q = jax.random.normal(kq, (B, S, Dk), dtype=jnp.float32)
    k = jax.random.normal(kk, (B, S, Dk), dtype=jnp.float32)
    v = jax.random.normal(kv_key, (B, S, Dv), dtype=jnp.float32)

    out = jax.block_until_ready(dot_product_attention(q, k, v))

    ref = _reference(q, k, v)
    np.testing.assert_allclose(np.asarray(out), np.asarray(ref),
                               rtol=1e-4, atol=1e-4)

    print("KERNEL_OK")
</pallas_src>

<mosaic_0001>
module attributes {stable_mosaic.version = 11 : i64} {
  func.func @_flash_attention_kernel(%arg0: i32, %arg1: i32, %arg2: i32, %arg3: memref<2x8x32xf32, #tpu.memory_space<vmem>>, %arg4: memref<2x8x32xf32, #tpu.memory_space<vmem>>, %arg5: memref<2x8x32xf32, #tpu.memory_space<vmem>>, %arg6: memref<2x8x32xf32, #tpu.memory_space<vmem>>, %arg7: memref<2x8x1xf32, #tpu.memory_space<vmem>>, %arg8: memref<2x8x1xf32, #tpu.memory_space<vmem>>, %arg9: memref<2x8x32xf32, #tpu.memory_space<vmem>>) attributes {dimension_semantics = [#tpu.dimension_semantics<parallel>, #tpu.dimension_semantics<parallel>, #tpu.dimension_semantics<arbitrary>], iteration_bounds = array<i64: 1, 1, 1>, scalar_prefetch = 0 : i64, scratch_operands = 3 : i64, tpu.core_type = #tpu.core_type<tc>, window_params = [{transform_indices = @transform_0, window_bounds = array<i64: 2, 8, 32>}, {transform_indices = @transform_1, window_bounds = array<i64: 2, 8, 32>}, {transform_indices = @transform_2, window_bounds = array<i64: 2, 8, 32>}, {transform_indices = @transform_3, window_bounds = array<i64: 2, 8, 32>}]} {
    %c0_i32 = arith.constant 0 : i32
    %0 = arith.cmpi eq, %arg2, %c0_i32 : i32
    %1 = arith.extui %0 : i1 to i32
    %c0_i32_0 = arith.constant 0 : i32
    %2 = arith.cmpi ne, %1, %c0_i32_0 : i32
    scf.if %2 {
      %cst_33 = arith.constant 0xFF800000 : f32
      %34 = vector.broadcast %cst_33 : f32 to vector<2x8x1xf32>
      %c0_34 = arith.constant 0 : index
      %c0_35 = arith.constant 0 : index
      %c0_36 = arith.constant 0 : index
      %35 = vector.load %arg7[%c0_34, %c0_35, %c0_36] : memref<2x8x1xf32, #tpu.memory_space<vmem>>, vector<2x8x1xf32>
      tpu.vector_store %arg7[%c0_34, %c0_35, %c0_36], %34 {strides = array<i32>} : memref<2x8x1xf32, #tpu.memory_space<vmem>>, vector<2x8x1xf32>,
      %cst_37 = arith.constant 0.000000e+00 : f32
      %36 = vector.broadcast %cst_37 : f32 to vector<2x8x1xf32>
      %c0_38 = arith.constant 0 : index
      %c0_39 = arith.constant 0 : index
      %c0_40 = arith.constant 0 : index
      %37 = vector.load %arg8[%c0_38, %c0_39, %c0_40] : memref<2x8x1xf32, #tpu.memory_space<vmem>>, vector<2x8x1xf32>
      tpu.vector_store %arg8[%c0_38, %c0_39, %c0_40], %36 {strides = array<i32>} : memref<2x8x1xf32, #tpu.memory_space<vmem>>, vector<2x8x1xf32>,
      %cst_41 = arith.constant 0.000000e+00 : f32
      %38 = vector.broadcast %cst_41 : f32 to vector<2x8x32xf32>
      %c0_42 = arith.constant 0 : index
      %c0_43 = arith.constant 0 : index
      %c0_44 = arith.constant 0 : index
      %39 = vector.load %arg9[%c0_42, %c0_43, %c0_44] : memref<2x8x32xf32, #tpu.memory_space<vmem>>, vector<2x8x32xf32>
      tpu.vector_store %arg9[%c0_42, %c0_43, %c0_44], %38 {strides = array<i32>} : memref<2x8x32xf32, #tpu.memory_space<vmem>>, vector<2x8x32xf32>,
    } else {
    }
    %c0 = arith.constant 0 : index
    %c0_1 = arith.constant 0 : index
    %c0_2 = arith.constant 0 : index
    %3 = vector.load %arg3[%c0, %c0_1, %c0_2] : memref<2x8x32xf32, #tpu.memory_space<vmem>>, vector<2x8x32xf32>
    %c0_3 = arith.constant 0 : index
    %c0_4 = arith.constant 0 : index
    %c0_5 = arith.constant 0 : index
    %4 = vector.load %arg4[%c0_3, %c0_4, %c0_5] : memref<2x8x32xf32, #tpu.memory_space<vmem>>, vector<2x8x32xf32>
    %c0_6 = arith.constant 0 : index
    %c0_7 = arith.constant 0 : index
    %c0_8 = arith.constant 0 : index
    %5 = vector.load %arg5[%c0_6, %c0_7, %c0_8] : memref<2x8x32xf32, #tpu.memory_space<vmem>>, vector<2x8x32xf32>
    %cst = arith.constant 5.65685415 : f32
    %6 = vector.broadcast %cst : f32 to vector<2x8x32xf32>
    %7 = arith.mulf %3, %6 : vector<2x8x32xf32>
    "tpu.trace_start"() <{level = 10 : i32, message = "bqd,bkd->bqk"}> : () -> ()
    %cst_9 = arith.constant dense<0.000000e+00> : vector<2x8x8xf32>
    %8 = tpu.matmul %7, %4, %cst_9 {dimension_numbers = #tpu.dot_dimension_numbers<[2], [2], [1], [1], [0, 0, 0, 1, 1, 1], [0], [0]>} : vector<2x8x32xf32>, vector<2x8x32xf32>, vector<2x8x8xf32> -> vector<2x8x8xf32>
    "tpu.trace_stop"() : () -> ()
    %c0_10 = arith.constant 0 : index
    %c0_11 = arith.constant 0 : index
    %c0_12 = arith.constant 0 : index
    %9 = vector.load %arg7[%c0_10, %c0_11, %c0_12] : memref<2x8x1xf32, #tpu.memory_space<vmem>>, vector<2x8x1xf32>
    %cst_13 = arith.constant dense<0xFF800000> : vector<2x8xf32>
    %10 = vector.multi_reduction <maximumf>, %8, %cst_13 [2] : vector<2x8x8xf32> to vector<2x8xf32>
    %11 = vector.shape_cast %10 : vector<2x8xf32> to vector<2x8x1xf32>
    %12 = arith.maximumf %9, %11 : vector<2x8x1xf32>
    %13 = arith.subf %9, %12 : vector<2x8x1xf32>
    %14 = math.exp %13 : vector<2x8x1xf32>
    %15 = vector.broadcast %12 : vector<2x8x1xf32> to vector<2x8x8xf32>
    %16 = arith.subf %8, %15 : vector<2x8x8xf32>
    %17 = math.exp %16 : vector<2x8x8xf32>
    %c0_14 = arith.constant 0 : index
    %c0_15 = arith.constant 0 : index
    %c0_16 = arith.constant 0 : index
    %18 = vector.load %arg8[%c0_14, %c0_15, %c0_16] : memref<2x8x1xf32, #tpu.memory_space<vmem>>, vector<2x8x1xf32>
    %19 = arith.mulf %14, %18 : vector<2x8x1xf32>
    %cst_17 = arith.constant dense<0.000000e+00> : vector<2x8xf32>
    %20 = vector.multi_reduction <add>, %17, %cst_17 [2] : vector<2x8x8xf32> to vector<2x8xf32>
    %21 = vector.shape_cast %20 : vector<2x8xf32> to vector<2x8x1xf32>
    %22 = arith.addf %19, %21 : vector<2x8x1xf32>
    %c0_18 = arith.constant 0 : index
    %c0_19 = arith.constant 0 : index
    %c0_20 = arith.constant 0 : index
    %23 = vector.load %arg8[%c0_18, %c0_19, %c0_20] : memref<2x8x1xf32, #tpu.memory_space<vmem>>, vector<2x8x1xf32>
    tpu.vector_store %arg8[%c0_18, %c0_19, %c0_20], %22 {strides = array<i32>} : memref<2x8x1xf32, #tpu.memory_space<vmem>>, vector<2x8x1xf32>,
    %c0_21 = arith.constant 0 : index
    %c0_22 = arith.constant 0 : index
    %c0_23 = arith.constant 0 : index
    %24 = vector.load %arg9[%c0_21, %c0_22, %c0_23] : memref<2x8x32xf32, #tpu.memory_space<vmem>>, vector<2x8x32xf32>
    %25 = vector.broadcast %14 : vector<2x8x1xf32> to vector<2x8x32xf32>
    %26 = arith.mulf %25, %24 : vector<2x8x32xf32>
    "tpu.trace_start"() <{level = 10 : i32, message = "bqk,bkd->bqd"}> : () -> ()
    %cst_24 = arith.constant dense<0.000000e+00> : vector<2x8x32xf32>
    %27 = tpu.matmul %17, %5, %cst_24 {dimension_numbers = #tpu.dot_dimension_numbers<[2], [1], [1], [2], [0, 0, 0, 1, 1, 2], [0], [0]>} : vector<2x8x8xf32>, vector<2x8x32xf32>, vector<2x8x32xf32> -> vector<2x8x32xf32>
    "tpu.trace_stop"() : () -> ()
    %28 = arith.addf %26, %27 : vector<2x8x32xf32>
    %c0_25 = arith.constant 0 : index
    %c0_26 = arith.constant 0 : index
    %c0_27 = arith.constant 0 : index
    %29 = vector.load %arg9[%c0_25, %c0_26, %c0_27] : memref<2x8x32xf32, #tpu.memory_space<vmem>>, vector<2x8x32xf32>
    tpu.vector_store %arg9[%c0_25, %c0_26, %c0_27], %28 {strides = array<i32>} : memref<2x8x32xf32, #tpu.memory_space<vmem>>, vector<2x8x32xf32>,
    %c0_28 = arith.constant 0 : index
    %c0_29 = arith.constant 0 : index
    %c0_30 = arith.constant 0 : index
    %30 = vector.load %arg7[%c0_28, %c0_29, %c0_30] : memref<2x8x1xf32, #tpu.memory_space<vmem>>, vector<2x8x1xf32>
    tpu.vector_store %arg7[%c0_28, %c0_29, %c0_30], %12 {strides = array<i32>} : memref<2x8x1xf32, #tpu.memory_space<vmem>>, vector<2x8x1xf32>,
    %c0_i32_31 = arith.constant 0 : i32
    %31 = arith.cmpi eq, %arg2, %c0_i32_31 : i32
    %32 = arith.extui %31 : i1 to i32
    %c0_i32_32 = arith.constant 0 : i32
    %33 = arith.cmpi ne, %32, %c0_i32_32 : i32
    scf.if %33 {
      %c0_33 = arith.constant 0 : index
      %c0_34 = arith.constant 0 : index
      %c0_35 = arith.constant 0 : index
      %34 = vector.load %arg8[%c0_33, %c0_34, %c0_35] : memref<2x8x1xf32, #tpu.memory_space<vmem>>, vector<2x8x1xf32>
      %35 = tpu.reciprocal %34 {approx = true} : vector<2x8x1xf32> -> vector<2x8x1xf32>
      %36 = arith.mulf %34, %35 : vector<2x8x1xf32>
      %cst_36 = arith.constant 2.000000e+00 : f32
      %37 = vector.broadcast %cst_36 : f32 to vector<2x8x1xf32>
      %38 = arith.subf %37, %36 : vector<2x8x1xf32>
      %39 = arith.mulf %35, %38 : vector<2x8x1xf32>
      %c0_37 = arith.constant 0 : index
      %c0_38 = arith.constant 0 : index
      %c0_39 = arith.constant 0 : index
      %40 = vector.load %arg9[%c0_37, %c0_38, %c0_39] : memref<2x8x32xf32, #tpu.memory_space<vmem>>, vector<2x8x32xf32>
      %41 = vector.broadcast %39 : vector<2x8x1xf32> to vector<2x8x32xf32>
      %42 = arith.mulf %40, %41 : vector<2x8x32xf32>
      %c0_40 = arith.constant 0 : index
      %c0_41 = arith.constant 0 : index
      %c0_42 = arith.constant 0 : index
      %43 = vector.load %arg6[%c0_40, %c0_41, %c0_42] : memref<2x8x32xf32, #tpu.memory_space<vmem>>, vector<2x8x32xf32>
      tpu.vector_store %arg6[%c0_40, %c0_41, %c0_42], %42 {strides = array<i32>} : memref<2x8x32xf32, #tpu.memory_space<vmem>>, vector<2x8x32xf32>,
    } else {
    }
    return
  }
  func.func @transform_0(%arg0: i32, %arg1: i32, %arg2: i32) -> (i32, i32, i32) {
    %c0_i32 = arith.constant 0 : i32
    %c0_i32_0 = arith.constant 0 : i32
    return %arg0, %arg1, %c0_i32 : i32, i32, i32
  }
  func.func @transform_1(%arg0: i32, %arg1: i32, %arg2: i32) -> (i32, i32, i32) {
    %c0_i32 = arith.constant 0 : i32
    %c0_i32_0 = arith.constant 0 : i32
    return %arg0, %arg2, %c0_i32 : i32, i32, i32
  }
  func.func @transform_2(%arg0: i32, %arg1: i32, %arg2: i32) -> (i32, i32, i32) {
    %c0_i32 = arith.constant 0 : i32
    %c0_i32_0 = arith.constant 0 : i32
    return %arg0, %arg2, %c0_i32 : i32, i32, i32
  }
  func.func @transform_3(%arg0: i32, %arg1: i32, %arg2: i32) -> (i32, i32, i32) {
    %c0_i32 = arith.constant 0 : i32
    %c0_i32_0 = arith.constant 0 : i32
    return %arg0, %arg1, %c0_i32 : i32, i32, i32
  }
}

</mosaic_0001>

<bundles_post_ra>
// kernel: tpu_custom_call.1
= control target key start
LH: loop header
LB: loop body
LE: loop exit
PB: predicated region body
PF: predicated region fallthrough
CT: control target
= control target key end

     0   :  { %8 = vsyncpa [#allocation6], 0  ;;  %s767_s0 = inlined_call_operand.hbm [shape: f32[2,8,32], index: 0, kind: input, shape index: {}]   ;;  %s768_s1 = inlined_call_operand.hbm [shape: f32[2,8,32], index: 1, kind: input, shape index: {}]   ;;  %s769_s2 = inlined_call_operand.hbm [shape: f32[2,8,32], index: 2, kind: input, shape index: {}]   ;;  %s770_s3 = inlined_call_operand.hbm [shape: f32[2,8,32], index: 3, kind: output, shape index: {}]  }
   0x1   :  { %9 = vsyncpa [#allocation9], 0 }
   0x2   :  { %10 = vsyncpa [#allocation7], 0  ;;  %s642_s12 = smov [#allocation8]   ;;  %s643_s14 = smov [#allocation5]  }
   0x3   :  { %s28_s13 = sshll.u32 %s642_s12, 4  ;;  %s16_s15 = sshll.u32 %s643_s14, 4  ;;  %s29_s13 = int_to_ptr.vmem [resolvable:$true] %s28_s13  ;;  %s672_s15 = int_to_ptr.vmem [resolvable:$true] %s16_s15 }
   0x4   :  { %s548_s18 = scalar_lea.hbm %s768_s1, 256 }
   0x5   :  { %p549_p0 = scmp.ne.s32.totalorder %s768_s1, %s548_s18  ;;  %p552_p1 = scmp.lt.u32.totalorder %s548_s18, %s768_s1 }
   0x7   :  { %p554_p2 = pnand %p552_p1, %p549_p0 }
   0x9   :  { %557 = shalt.err (!%p554_p2)
}
   0xa   :  { %s558_s23 = scalar_lea.vmem %s29_s13, 256  ;;  %p563_p4 = scmp.lt.s32.totalorder %s29_s13, %s29_s13 }
   0xb   :  { %p559_p3 = scmp.ne.s32.totalorder %s29_s13, %s558_s23  ;;  %p564_p5 = scmp.lt.s32.totalorder %s558_s23, %s558_s23 }
   0xd   :  { %p565_p6 = por %p564_p5, %p563_p4 }
   0xf   :  { %p566_p7 = pnand %p565_p6, %p559_p3 }
  0x11   :  { %569 = shalt.err (!%p566_p7)
}
  0x12   :  { %s644_s24 = smov 128   ;;  %s645_s25 = smov 8  }
  0x13   :  { %34 = dma.hbm_to_vmem [thread:$0]  %s768_s1, 256, %s29_s13, [#allocation9], %s644_s24, %s644_s24, %s645_s25  }
  0x14   :  { %s570_s30 = scalar_lea.hbm %s767_s0, 256 }
  0x15   :  { %p571_p8 = scmp.ne.s32.totalorder %s767_s0, %s570_s30  ;;  %p574_p9 = scmp.lt.u32.totalorder %s570_s30, %s767_s0 }
  0x17   :  { %p576_p10 = pnand %p574_p9, %p571_p8 }
  0x19   :  { %579 = shalt.err (!%p576_p10)
}
  0x1a   :  { %s580_s8 = scalar_lea.vmem %s672_s15, 256  ;;  %p585_p12 = scmp.lt.s32.totalorder %s672_s15, %s672_s15 }
  0x1b   :  { %p581_p11 = scmp.ne.s32.totalorder %s672_s15, %s580_s8  ;;  %p586_p13 = scmp.lt.s32.totalorder %s580_s8, %s580_s8 }
  0x1d   :  { %p587_p0 = por %p586_p13, %p585_p12 }
  0x1f   :  { %p588_p1 = pnand %p587_p0, %p581_p11 }
  0x21   :  { %591 = shalt.err (!%p588_p1)
}
  0x22   :  { %22 = dma.hbm_to_vmem [thread:$0]  %s767_s0, 256, %s672_s15, [#allocation6], %s644_s24, %s644_s24, %s645_s25  }
  0x23   :  { %s646_s10 = smov [#allocation10]   ;;  %s592_s14 = scalar_lea.hbm %s769_s2, 256 }
  0x24   :  { %s40_s11 = sshll.u32 %s646_s10, 4  ;;  %p593_p2 = scmp.ne.s32.totalorder %s769_s2, %s592_s14  ;;  %s41_s11 = int_to_ptr.vmem [resolvable:$true] %s40_s11 }
  0x25   :  { %p596_p3 = scmp.lt.u32.totalorder %s592_s14, %s769_s2 }
  0x27   :  { %p598_p4 = pnand %p596_p3, %p593_p2 }
  0x29   :  { %601 = shalt.err (!%p598_p4)
}
  0x2a   :  { %s602_s20 = scalar_lea.vmem %s41_s11, 256  ;;  %p607_p6 = scmp.lt.s32.totalorder %s41_s11, %s41_s11 }
  0x2b   :  { %p603_p5 = scmp.ne.s32.totalorder %s41_s11, %s602_s20  ;;  %p608_p7 = scmp.lt.s32.totalorder %s602_s20, %s602_s20 }
  0x2d   :  { %p609_p8 = por %p608_p7, %p607_p6 }
  0x2f   :  { %p610_p9 = pnand %p609_p8, %p603_p5 }
  0x31   :  { %613 = shalt.err (!%p610_p9)
}
  0x32   :  { %46 = dma.hbm_to_vmem [thread:$0]  %s769_s2, 256, %s41_s11, [#allocation9], %s644_s24, %s644_s24, %s645_s25  }
  0x33   :  { %636 = dma.done.wait [#allocation6], 256  }
  0x34   :  { %637 = vsyncadd [#allocation6], 4294967040 }
  0x35   :  { %638 = dma.done.wait [#allocation9], 512  }
  0x36   :  { %639 = vsyncadd [#allocation9], 4294966784  ;;  %vm65_vm0 = vcmask 261120   ;;  %v647_v0 = vmov 0.0   ;;  %vm648_vm1 = vmmov 0   ;;  %v70_v1 = vld [vmem:[#allocation8] sm:$0xff] }
  0x37   :  { %504 = vmatprep.subr.mxu0 %v647_v0  ;;  %66 = vst.msk [vmem:[#allocation4] sm:$0xff] %vm65_vm0, %v647_v0  ;;  %67 = vst.msk [vmem:[#allocation4 + $0x8] sm:$0xff] %vm65_vm0, %v647_v0  ;;  %506 = vmatprep.mubr.msk.f32.mxu0 %vm648_vm1, %v647_v0  ;;  %v68_v2 = vld [vmem:[#allocation5] sm:$0xff]  ;;  %v71_v3 = vld [vmem:[#allocation8 + $0x8] sm:$0xff]  ;;  %vm60_vm2 = vcmask 7168   ;;  %v649_v7 = vmov -inf  }
  0x38   :  { %509 = vmatprep.subr.mxu1 %v647_v0  ;;  %511 = vmatprep.mubr.msk.f32.mxu1 %vm648_vm1, %v647_v0  ;;  %v74_v4 = vmul.f32 5.656854, %v68_v2  ;;  %v69_v5 = vld [vmem:[#allocation5 + $0x8] sm:$0xff]  ;;  %61 = vst.msk [vmem:[#allocation2] sm:$0xff] %vm60_vm2, %v649_v7  ;;  %62 = vst.msk [vmem:[#allocation2 + $0x8] sm:$0xff] %vm60_vm2, %v649_v7  ;;  %vm231_vm3 = vcmask 64512  }
  0x39   :  { %505 = vmatpush3.xpose.msk.msra.mxu0 %vm65_vm0, %v70_v1  ;;  %510 = vmatpush3.xpose.msk.msra.mxu1 %vm65_vm0, %v71_v3  ;;  %v75_v6 = vmul.f32 5.656854, %v69_v5  ;;  %63 = vst.msk [vmem:[#allocation3] sm:$0xff] %vm60_vm2, %v647_v0  ;;  %64 = vst.msk [vmem:[#allocation3 + $0x8] sm:$0xff] %vm60_vm2, %v647_v0  ;;  %v650_v14 = vmov 0   ;;  %v72_v23 = vld [vmem:[#allocation10] sm:$0xff] }
  0x3a   :  { %514 = vmatprep.subr.mxu0 %v647_v0  ;;  %519 = vmatprep.subr.mxu1 %v647_v0  ;;  %v73_v24 = vld [vmem:[#allocation10 + $0x8] sm:$0xff]  ;;  %s651_s2 = smov [#allocation11]  }
  0x3b   :  { %534 = vset.pattern.permute.xlu1 %v650_v14  ;;  %535 = vset.pattern.permute.xlu0 %v650_v14  ;;  %s477_s21 = sshll.u32 %s651_s2, 4  ;;  %s478_s21 = int_to_ptr.vmem [resolvable:$true] %s477_s21 }
  0x3c   :  { %507 = vmatmul.mubr.msk.f32.vlgmr.msra.gmra.mrb[0].mxu0 %vm65_vm0, %v74_v4  ;;  %512 = vmatmul.mubr.msk.f32.vlgmr.msra.gmra.mrb[0].mxu1 %vm65_vm0, %v75_v6  ;;  %s614_s22 = scalar_lea.vmem %s478_s21, 256  ;;  %p619_p11 = scmp.lt.s32.totalorder %s478_s21, %s478_s21 }
  0x3d   :  { %516 = vmatprep.mubr.msk.f32.mxu0 %vm648_vm1, %v647_v0  ;;  %521 = vmatprep.mubr.msk.f32.mxu1 %vm648_vm1, %v647_v0  ;;  %p615_p10 = scmp.ne.s32.totalorder %s478_s21, %s614_s22  ;;  %p620_p12 = scmp.lt.s32.totalorder %s614_s22, %s614_s22 }
  0x3e   :  { %515 = vmatpush3.msra.mxu0 %v72_v23  ;;  %520 = vmatpush3.msra.mxu1 %v73_v24  ;;  %v277_v57 = vld [vmem:[#allocation4] sm:$0xff]  ;;  %v278_v60 = vld [vmem:[#allocation4 + $0x8] sm:$0xff] }
  0x3f   :  { %v229_v15 = vld [vmem:[#allocation2] sm:$0xff]  ;;  %v230_v18 = vld [vmem:[#allocation2 + $0x8] sm:$0xff]  ;;  %p621_p13 = por %p620_p12, %p619_p11 }
  0x40   :  { %v262_v39 = vld [vmem:[#allocation3] sm:$0xff]  ;;  %v263_v42 = vld [vmem:[#allocation3 + $0x8] sm:$0xff] }
  0x41   :  { %p622_p0 = pnand %p621_p13, %p615_p10 }
 0x10f   :  { %v149_v8 = vpop.f32.mrb[0].mxu0  ;;  %v225_v9 = vpop.f32.mrb[0].mxu1 }
 0x110   :  { %v508_v10 = vpop.f32.mrb[1].mxu0  ;;  %v232_v11 = vsel %vm231_vm3, %v149_v8, -inf  ;;  %v513_v12 = vpop.f32.mrb[1].mxu1  ;;  %v235_v13 = vsel %vm231_vm3, %v225_v9, -inf }
 0x111   :  { %233 = vmax.xlane.f32.xlu0 %v232_v11 }
 0x115   :  { %236 = vmax.xlane.f32.xlu0 %v235_v13 }
 0x19e   :  { %v234_v16 = vpop.xlane.xlu0 %233 }
 0x19f   :  { %v238_v17 = vmax.f32 %v229_v15, %v234_v16 }
 0x1a1   :  { %v240_v19 = vsub.f32 %v229_v15, %v238_v17  ;;  %441 = vst.msk [vmem:[#allocation2] sm:$0xff] %vm60_vm2, %v238_v17  ;;  %248 = vperm.xlu1 %534, %v238_v17  }
 0x1a2   :  { %v237_v20 = vpop.xlane.xlu0 %236 }
 0x1a3   :  { %v239_v21 = vmax.f32 %v230_v18, %v237_v20  ;;  %v242_v36 = vmul.f32 1.442695, %v240_v19 }
 0x1a5   :  { %v241_v22 = vsub.f32 %v230_v18, %v239_v21  ;;  %442 = vst.msk [vmem:[#allocation2 + $0x8] sm:$0xff] %vm60_vm2, %v239_v21  ;;  %253 = vperm.xlu1 %534, %v239_v21  }
 0x1a7   :  { %v244_v35 = vmul.f32 1.442695, %v241_v22 }
 0x220   :  { %v249_v25 = vpop.permute.xlu1 %248 }
 0x221   :  { %v256_v26 = vsub.f32 %v149_v8, %v249_v25 }
 0x223   :  { %v258_v27 = vmul.f32 1.442695, %v256_v26 }
 0x224   :  { %v254_v28 = vpop.permute.xlu1 %253 }
 0x225   :  { %536 = vpow2.f32 %v258_v27  ;;  %v257_v29 = vsub.f32 %v225_v9, %v254_v28 }
 0x227   :  { %v260_v30 = vmul.f32 1.442695, %v257_v29 }
 0x229   :  { %538 = vpow2.f32 %v260_v30 }
 0x22a   :  { %540 = vpow2.f32 %v244_v35 }
 0x22b   :  { %542 = vpow2.f32 %v242_v36 }
 0x22f   :  { %v537_v31 = vpop.eup %536 }
 0x230   :  { %517 = vmatmul.mubr.msk.f32.vlgmr.msra.gmra.mrb[2].mxu0 %vm231_vm3, %v537_v31  ;;  %v266_v32 = vsel %vm231_vm3, %v537_v31, 0.0 }
 0x231   :  { %267 = vadd.xlane.f32.xlu0 %v266_v32 }
 0x233   :  { %v539_v33 = vpop.eup %538 }
 0x234   :  { %522 = vmatmul.mubr.msk.f32.vlgmr.msra.gmra.mrb[2].mxu1 %vm231_vm3, %v539_v33  ;;  %v269_v34 = vsel %vm231_vm3, %v539_v33, 0.0  ;;  %v541_v37 = vpop.eup %540 }
 0x235   :  { %270 = vadd.xlane.f32.xlu1 %v269_v34  ;;  %v543_v38 = vpop.eup %542  ;;  %v265_v44 = vmul.f32 %v541_v37, %v263_v42 }
 0x236   :  { %v264_v40 = vmul.f32 %v543_v38, %v262_v39 }
 0x246   :  { %286 = vperm.xlu1 %534, %v541_v37  }
 0x247   :  { %281 = vperm.xlu0 %535, %v543_v38  }
 0x2be   :  { %v268_v41 = vpop.xlane.xlu0 %267 }
 0x2bf   :  { %v272_v43 = vadd.f32 %v268_v41, %v264_v40 }
 0x2c1   :  { %275 = vst.msk [vmem:[#allocation3] sm:$0xff] %vm60_vm2, %v272_v43 }
 0x2c2   :  { %v271_v45 = vpop.xlane.xlu1 %270 }
 0x2c3   :  { %v273_v46 = vadd.f32 %v271_v45, %v265_v44 }
 0x2c5   :  { %276 = vst.msk [vmem:[#allocation3 + $0x8] sm:$0xff] %vm60_vm2, %v273_v46 }
 0x2c6   :  { %v282_v58 = vpop.permute.xlu0 %281  ;;  %v287_v61 = vpop.permute.xlu1 %286 }
 0x2c7   :  { %v289_v59 = vmul.f32 %v282_v58, %v277_v57  ;;  %v290_v1 = vmul.f32 %v287_v61, %v278_v60 }
 0x2c8   :  { %v446_v47 = vld [vmem:[#allocation3] sm:$0xff] }
 0x2c9   :  { %544 = vrcp.f32 %v446_v47 }
 0x2cc   :  { %v447_v48 = vld [vmem:[#allocation3 + $0x8] sm:$0xff] }
 0x2cd   :  { %546 = vrcp.f32 %v447_v48 }
 0x2d3   :  { %v545_v49 = vpop.eup %544 }
 0x2d4   :  { %v450_v50 = vmul.f32 %v545_v49, %v446_v47 }
 0x2d6   :  { %v452_v51 = vsub.f32 2.0, %v450_v50 }
 0x2d7   :  { %v547_v52 = vpop.eup %546 }
 0x2d8   :  { %v454_v53 = vmul.f32 %v545_v49, %v452_v51  ;;  %v451_v54 = vmul.f32 %v547_v52, %v447_v48 }
 0x2da   :  { %460 = vperm.xlu0 %535, %v454_v53   ;;  %v453_v55 = vsub.f32 2.0, %v451_v54 }
 0x2dc   :  { %v455_v56 = vmul.f32 %v547_v52, %v453_v55 }
 0x2de   :  { %465 = vperm.xlu0 %535, %v455_v56  }
 0x303   :  { %v360_v62 = vpop.f32.mrb[2].mxu0 }
 0x304   :  { %v437_v63 = vadd.f32 %v360_v62, %v289_v59  ;;  %v518_v0 = vpop.f32.mrb[3].mxu0 }
 0x306   :  { %439 = vst.msk [vmem:[#allocation4] sm:$0xff] %vm65_vm0, %v437_v63 }
 0x307   :  { %v433_v2 = vpop.f32.mrb[2].mxu1 }
 0x308   :  { %v438_v3 = vadd.f32 %v433_v2, %v290_v1  ;;  %v523_v4 = vpop.f32.mrb[3].mxu1 }
 0x30a   :  { %440 = vst.msk [vmem:[#allocation4 + $0x8] sm:$0xff] %vm65_vm0, %v438_v3 }
 0x30d   :  { %v456_v5 = vld [vmem:[#allocation4] sm:$0xff] }
 0x311   :  { %v457_v8 = vld [vmem:[#allocation4 + $0x8] sm:$0xff] }
 0x359   :  { %v461_v6 = vpop.permute.xlu0 %460 }
 0x35a   :  { %v468_v7 = vmul.f32 %v461_v6, %v456_v5 }
 0x35c   :  { %470 = vst.msk [vmem:[#allocation11] sm:$0xff] %vm65_vm0, %v468_v7 }
 0x35d   :  { %v466_v9 = vpop.permute.xlu0 %465 }
 0x35e   :  { %v469_v10 = vmul.f32 %v466_v9, %v457_v8 }
 0x360   :  { %471 = vst.msk [vmem:[#allocation11 + $0x8] sm:$0xff] %vm65_vm0, %v469_v10 }
 0x361   :  { %625 = shalt.err (!%p622_p0)
}
 0x362   :  { %s626_s27 = scalar_lea.hbm %s770_s3, 256 }
 0x363   :  { %p627_p1 = scmp.ne.s32.totalorder %s770_s3, %s626_s27  ;;  %p630_p2 = scmp.lt.u32.totalorder %s626_s27, %s770_s3 }
 0x365   :  { %p632_p3 = pnand %p630_p2, %p627_p1 }
 0x367   :  { %635 = shalt.err (!%p632_p3)
}
 0x368   :  { %483 = dma.vmem_to_hbm [thread:$0]  %s478_s21, 256, %s770_s3, [#allocation7], %s644_s24, %s644_s24, %s645_s25  }
 0x369   :  { %640 = dma.done.wait [#allocation7], 256  }
 0x36a   :  { %641 = vsyncadd [#allocation7], 4294967040 }
 0x36b   :  { %487 = vsyncpa [#allocation6], 1 }
 0x36c   :  { %488 = vsyncpa [#allocation9], 1 }
 0x36d   :  { %489 = vsyncpa [#allocation7], 1 }

</bundles_post_ra>
